<compile_context>
chip_gen: v5e
topology: v5e:2x2
jax: 0.10.0
libtpu: 0.0.40
codegen_flags: <defaults>
</compile_context>

<pallas_src>
import numpy as np
import jax
import jax.numpy as jnp
from jax.experimental import pallas as pl
from jax.experimental.pallas import tpu as pltpu


def _build_dft_matrices(h, w):
    """Precompute transposed forward/inverse 2-D DFT matrices with the
    fftshift / ifftshift permutations and the 1/(H*W) scale folded in.

    Returns f32 arrays (fwdT_r, fwdT_i, invT_r, invT_i), each (N, N), N=H*W,
    such that for a row-major flattened real slab x (shape (N,)):
        fshift_flat      = fwdT.T @ x        (== fftshift(fft2(X)) flattened)
        real(ifft2(ifftshift(A)))_flat = invT.T @ A_flat  (A complex, split)
    and in batched (TB, N) layout:  F = X @ fwdT,  OUT = A @ invT.
    """
    n = h * w
    jh = np.arange(h)
    jw = np.arange(w)
    fh = np.exp(-2j * np.pi * np.outer(jh, jh) / h)
    fw = np.exp(-2j * np.pi * np.outer(jw, jw) / w)

    # fft2 on row-major flattened slabs:  vec(F_H X F_W) = kron(F_H, F_W) vec(X)
    k_mat = np.kron(fh, fw)  # (n, n) complex

    # Forward matrix with fftshift baked into the output (row) ordering.
    fwd = np.fft.fftshift(k_mat.reshape(h, w, n), axes=(0, 1)).reshape(n, n)

    # Inverse matrix (1/n * conj(K)) with ifftshift baked into the input
    # (column) ordering:  vec(ifftshift(A)) = A_flat[perm]  =>  M @ A[perm]
    # == M[:, argsort(perm)] @ A.
    idx = np.arange(n).reshape(h, w)
    perm = np.fft.ifftshift(idx, axes=(0, 1)).reshape(n)
    inv = (np.conj(k_mat) / n)[:, np.argsort(perm)]

    fwd_t = fwd.T
    inv_t = inv.T
    return (jnp.asarray(fwd_t.real, dtype=jnp.float32),
            jnp.asarray(fwd_t.imag, dtype=jnp.float32),
            jnp.asarray(inv_t.real, dtype=jnp.float32),
            jnp.asarray(inv_t.imag, dtype=jnp.float32))


def _down_otf_kernel(x_ref, yr_ref, yi_ref,
                     fwdr_ref, fwdi_ref, invr_ref, invi_ref, o_ref):
    x = x_ref[...]            # (TB, N) real slabs, flattened & lane-dense
    yr = yr_ref[...]          # (TB, N) real part of OTF (unshifted)
    yi = yi_ref[...]          # (TB, N) imag part of OTF

    # fshift = fftshift(fft2(x))  -- shift folded into the forward matrix.
    fr = jnp.dot(x, fwdr_ref[...], preferred_element_type=jnp.float32)
    fi = jnp.dot(x, fwdi_ref[...], preferred_element_type=jnp.float32)

    # Elementwise complex multiply by y.
    ar = fr * yr - fi * yi
    ai = fr * yi + fi * yr

    # real(ifft2(ifftshift(A))) -- shift + 1/(H*W) folded into inverse matrix.
    o_ref[...] = (jnp.dot(ar, invr_ref[...], preferred_element_type=jnp.float32)
                  - jnp.dot(ai, invi_ref[...], preferred_element_type=jnp.float32))


def down_otf_pallas(x, y_re, y_im):
    """x: (B, C, H, W) float32 real image.
       y_re, y_im: (B, C, H, W) float32 real/imag parts of the (complex) OTF.
       Returns real(ifft2(ifftshift(fftshift(fft2(x)) * y))) as float32."""
    b, c, h, w = x.shape
    bc = b * c
    n = h * w

    xf = x.reshape(bc, n).astype(jnp.float32)
    yr = y_re.reshape(bc, n).astype(jnp.float32)
    yi = y_im.reshape(bc, n).astype(jnp.float32)

    # Batch many slabs per grid step; sublane dim must be a multiple of 8.
    tb = min(256, ((bc + 7) // 8) * 8)
    n_blocks = pl.cdiv(bc, tb)
    bc_pad = n_blocks * tb
    if bc_pad != bc:
        pad = ((0, bc_pad - bc), (0, 0))
        xf = jnp.pad(xf, pad)
        yr = jnp.pad(yr, pad)
        yi = jnp.pad(yi, pad)

    fwdr, fwdi, invr, invi = _build_dft_matrices(h, w)

    slab_spec = pl.BlockSpec((tb, n), lambda i: (i, 0))
    mat_spec = pl.BlockSpec((n, n), lambda i: (0, 0))

    out = pl.pallas_call(
        _down_otf_kernel,
        out_shape=jax.ShapeDtypeStruct((bc_pad, n), jnp.float32),
        grid_spec=pltpu.PrefetchScalarGridSpec(
            num_scalar_prefetch=0,
            grid=(n_blocks,),
            in_specs=[slab_spec, slab_spec, slab_spec,
                      mat_spec, mat_spec, mat_spec, mat_spec],
            out_specs=slab_spec,
        ),
        compiler_params=pltpu.CompilerParams(
            dimension_semantics=("parallel",),
            vmem_limit_bytes=32 * 1024 * 1024,
        ),
    )(xf, yr, yi, fwdr, fwdi, invr, invi)

    return out[:bc].reshape(b, c, h, w)


def down_otf_reference(x, y_re, y_im):
    y = y_re.astype(jnp.complex64) + 1j * y_im.astype(jnp.complex64)
    f = jnp.fft.fft2(x.astype(jnp.complex64))
    fshift = jnp.fft.fftshift(f, axes=(-2, -1))
    a = fshift * y
    ia = jnp.fft.ifftshift(a, axes=(-2, -1))
    return jnp.real(jnp.fft.ifft2(ia)).astype(jnp.float32)


if __name__ == "__main__":
    key = jax.random.PRNGKey(0)
    k1, k2, k3 = jax.random.split(key, 3)

    B, C, H, W = 2, 4, 16, 16
    x = jax.random.normal(k1, (B, C, H, W), dtype=jnp.float32)
    y_re = jax.random.normal(k2, (B, C, H, W), dtype=jnp.float32)
    y_im = jax.random.normal(k3, (B, C, H, W), dtype=jnp.float32)

    out = down_otf_pallas(x, y_re, y_im)
    out = jax.block_until_ready(out)

    ref = jax.block_until_ready(down_otf_reference(x, y_re, y_im))
    assert out.shape == (B, C, H, W)
    assert jnp.allclose(out, ref, atol=2e-3, rtol=2e-3), (
        float(jnp.max(jnp.abs(out - ref))))

    print("KERNEL_OK")
</pallas_src>

<mosaic_0001>
module attributes {stable_mosaic.version = 11 : i64} {
  func.func @_down_otf_kernel(%arg0: i32, %arg1: memref<8x256xf32, #tpu.memory_space<vmem>>, %arg2: memref<8x256xf32, #tpu.memory_space<vmem>>, %arg3: memref<8x256xf32, #tpu.memory_space<vmem>>, %arg4: memref<256x256xf32, #tpu.memory_space<vmem>>, %arg5: memref<256x256xf32, #tpu.memory_space<vmem>>, %arg6: memref<256x256xf32, #tpu.memory_space<vmem>>, %arg7: memref<256x256xf32, #tpu.memory_space<vmem>>, %arg8: memref<8x256xf32, #tpu.memory_space<vmem>>) attributes {dimension_semantics = [#tpu.dimension_semantics<parallel>], iteration_bounds = array<i64: 1>, scalar_prefetch = 0 : i64, scratch_operands = 0 : i64, tpu.core_type = #tpu.core_type<tc>, window_params = [{transform_indices = @transform_0, window_bounds = array<i64: 8, 256>}, {transform_indices = @transform_1, window_bounds = array<i64: 8, 256>}, {transform_indices = @transform_2, window_bounds = array<i64: 8, 256>}, {pipeline_mode = #tpu.pipeline_mode<synchronous>, transform_indices = @transform_3, window_bounds = array<i64: 256, 256>}, {pipeline_mode = #tpu.pipeline_mode<synchronous>, transform_indices = @transform_4, window_bounds = array<i64: 256, 256>}, {pipeline_mode = #tpu.pipeline_mode<synchronous>, transform_indices = @transform_5, window_bounds = array<i64: 256, 256>}, {pipeline_mode = #tpu.pipeline_mode<synchronous>, transform_indices = @transform_6, window_bounds = array<i64: 256, 256>}, {transform_indices = @transform_7, window_bounds = array<i64: 8, 256>}]} {
    %c0 = arith.constant 0 : index
    %c0_0 = arith.constant 0 : index
    %0 = vector.load %arg1[%c0, %c0_0] : memref<8x256xf32, #tpu.memory_space<vmem>>, vector<8x256xf32>
    %c0_1 = arith.constant 0 : index
    %c0_2 = arith.constant 0 : index
    %1 = vector.load %arg2[%c0_1, %c0_2] : memref<8x256xf32, #tpu.memory_space<vmem>>, vector<8x256xf32>
    %c0_3 = arith.constant 0 : index
    %c0_4 = arith.constant 0 : index
    %2 = vector.load %arg3[%c0_3, %c0_4] : memref<8x256xf32, #tpu.memory_space<vmem>>, vector<8x256xf32>
    %c0_5 = arith.constant 0 : index
    %c0_6 = arith.constant 0 : index
    %3 = vector.load %arg4[%c0_5, %c0_6] : memref<256x256xf32, #tpu.memory_space<vmem>>, vector<256x256xf32>
    %cst = arith.constant dense<0.000000e+00> : vector<8x256xf32>
    %4 = tpu.matmul %0, %3, %cst {dimension_numbers = #tpu.dot_dimension_numbers<[1], [0], [0], [1], [0, 0, 1, 1], [], []>} : vector<8x256xf32>, vector<256x256xf32>, vector<8x256xf32> -> vector<8x256xf32>
    %c0_7 = arith.constant 0 : index
    %c0_8 = arith.constant 0 : index
    %5 = vector.load %arg5[%c0_7, %c0_8] : memref<256x256xf32, #tpu.memory_space<vmem>>, vector<256x256xf32>
    %cst_9 = arith.constant dense<0.000000e+00> : vector<8x256xf32>
    %6 = tpu.matmul %0, %5, %cst_9 {dimension_numbers = #tpu.dot_dimension_numbers<[1], [0], [0], [1], [0, 0, 1, 1], [], []>} : vector<8x256xf32>, vector<256x256xf32>, vector<8x256xf32> -> vector<8x256xf32>
    %7 = arith.mulf %4, %1 : vector<8x256xf32>
    %8 = arith.mulf %6, %2 : vector<8x256xf32>
    %9 = arith.subf %7, %8 : vector<8x256xf32>
    %10 = arith.mulf %4, %2 : vector<8x256xf32>
    %11 = arith.mulf %6, %1 : vector<8x256xf32>
    %12 = arith.addf %10, %11 : vector<8x256xf32>
    %c0_10 = arith.constant 0 : index
    %c0_11 = arith.constant 0 : index
    %13 = vector.load %arg6[%c0_10, %c0_11] : memref<256x256xf32, #tpu.memory_space<vmem>>, vector<256x256xf32>
    %cst_12 = arith.constant dense<0.000000e+00> : vector<8x256xf32>
    %14 = tpu.matmul %9, %13, %cst_12 {dimension_numbers = #tpu.dot_dimension_numbers<[1], [0], [0], [1], [0, 0, 1, 1], [], []>} : vector<8x256xf32>, vector<256x256xf32>, vector<8x256xf32> -> vector<8x256xf32>
    %c0_13 = arith.constant 0 : index
    %c0_14 = arith.constant 0 : index
    %15 = vector.load %arg7[%c0_13, %c0_14] : memref<256x256xf32, #tpu.memory_space<vmem>>, vector<256x256xf32>
    %cst_15 = arith.constant dense<0.000000e+00> : vector<8x256xf32>
    %16 = tpu.matmul %12, %15, %cst_15 {dimension_numbers = #tpu.dot_dimension_numbers<[1], [0], [0], [1], [0, 0, 1, 1], [], []>} : vector<8x256xf32>, vector<256x256xf32>, vector<8x256xf32> -> vector<8x256xf32>
    %17 = arith.subf %14, %16 : vector<8x256xf32>
    %c0_16 = arith.constant 0 : index
    %c0_17 = arith.constant 0 : index
    %18 = vector.load %arg8[%c0_16, %c0_17] : memref<8x256xf32, #tpu.memory_space<vmem>>, vector<8x256xf32>
    tpu.vector_store %arg8[%c0_16, %c0_17], %17 {strides = array<i32>} : memref<8x256xf32, #tpu.memory_space<vmem>>, vector<8x256xf32>,
    return
  }
  func.func @transform_0(%arg0: i32) -> (i32, i32) {
    %c0_i32 = arith.constant 0 : i32
    %c0_i32_0 = arith.constant 0 : i32
    return %arg0, %c0_i32 : i32, i32
  }
  func.func @transform_1(%arg0: i32) -> (i32, i32) {
    %c0_i32 = arith.constant 0 : i32
    %c0_i32_0 = arith.constant 0 : i32
    return %arg0, %c0_i32 : i32, i32
  }
  func.func @transform_2(%arg0: i32) -> (i32, i32) {
    %c0_i32 = arith.constant 0 : i32
    %c0_i32_0 = arith.constant 0 : i32
    return %arg0, %c0_i32 : i32, i32
  }
  func.func @transform_3(%arg0: i32) -> (i32, i32) {
    %c0_i32 = arith.constant 0 : i32
    %c0_i32_0 = arith.constant 0 : i32
    %c0_i32_1 = arith.constant 0 : i32
    return %c0_i32, %c0_i32_0 : i32, i32
  }
  func.func @transform_4(%arg0: i32) -> (i32, i32) {
    %c0_i32 = arith.constant 0 : i32
    %c0_i32_0 = arith.constant 0 : i32
    %c0_i32_1 = arith.constant 0 : i32
    return %c0_i32, %c0_i32_0 : i32, i32
  }
  func.func @transform_5(%arg0: i32) -> (i32, i32) {
    %c0_i32 = arith.constant 0 : i32
    %c0_i32_0 = arith.constant 0 : i32
    %c0_i32_1 = arith.constant 0 : i32
    return %c0_i32, %c0_i32_0 : i32, i32
  }
  func.func @transform_6(%arg0: i32) -> (i32, i32) {
    %c0_i32 = arith.constant 0 : i32
    %c0_i32_0 = arith.constant 0 : i32
    %c0_i32_1 = arith.constant 0 : i32
    return %c0_i32, %c0_i32_0 : i32, i32
  }
  func.func @transform_7(%arg0: i32) -> (i32, i32) {
    %c0_i32 = arith.constant 0 : i32
    %c0_i32_0 = arith.constant 0 : i32
    return %arg0, %c0_i32 : i32, i32
  }
}

</mosaic_0001>

<bundles_post_ra>
// kernel: tpu_custom_call.1
= control target key start
LH: loop header
LB: loop body
LE: loop exit
PB: predicated region body
PF: predicated region fallthrough
CT: control target
= control target key end

     0   :  { %12 = vsyncpa [#allocation3], 0  ;;  %s1046_s0 = inlined_call_operand.hbm [shape: f32[8,256], index: 0, kind: input, shape index: {}]   ;;  %s1047_s1 = inlined_call_operand.hbm [shape: f32[8,256], index: 1, kind: input, shape index: {}]   ;;  %s1048_s2 = inlined_call_operand.hbm [shape: f32[8,256], index: 2, kind: input, shape index: {}]   ;;  %s1049_s3 = inlined_call_operand.hbm [shape: f32[256,256], index: 3, kind: input, shape index: {}]   ;;  %s1050_s4 = inlined_call_operand.hbm [shape: f32[256,256], index: 4, kind: input, shape index: {}]   ;;  %s1051_s5 = inlined_call_operand.hbm [shape: f32[256,256], index: 5, kind: input, shape index: {}]   ;;  %s1052_s6 = inlined_call_operand.hbm [shape: f32[256,256], index: 6, kind: input, shape index: {}]   ;;  %s1053_s7 = inlined_call_operand.hbm [shape: f32[8,256], index: 7, kind: output, shape index: {}]  }
   0x1   :  { %13 = vsyncpa [#allocation6], 0 }
   0x2   :  { %14 = vsyncpa [#allocation9], 0 }
   0x3   :  { %15 = vsyncpa [#allocation12], 0  ;;  %s33_s26 = sshll.u32 %s1047_s1, 4  ;;  %s34_s26 = int_to_ptr.hbm [resolvable:$true] %s33_s26 }
   0x4   :  { %16 = vsyncpa [#allocation4], 0  ;;  %s960_s27 = smov [#allocation5]   ;;  %s54_s8 = sshll.u32 %s1049_s3, 4  ;;  %s55_s8 = int_to_ptr.hbm [resolvable:$true] %s54_s8 }
   0x5   :  { %s35_s28 = sshll.u32 %s960_s27, 4  ;;  %s961_s9 = smov [#allocation8]   ;;  %s36_s28 = int_to_ptr.vmem [resolvable:$true] %s35_s28 }
   0x6   :  { %38 = dma.hbm_to_vmem [thread:$0]  %s34_s26, 256, %s36_s28, [#allocation6]  }
   0x7   :  { %s56_s10 = sshll.u32 %s961_s9, 4  ;;  %s962_s11 = smov 256   ;;  %s57_s10 = int_to_ptr.vmem [resolvable:$true] %s56_s10 }
   0x8   :  { %s963_s12 = smov 16   ;;  %s80_s14 = sshll.u32 %s1051_s5, 4  ;;  %s81_s14 = int_to_ptr.hbm [resolvable:$true] %s80_s14 }
   0x9   :  { %62 = dma.hbm_to_vmem [thread:$0]  %s55_s8, 8192, %s57_s10, [#allocation9], %s962_s11, %s962_s11, %s963_s12  }
   0xa   :  { %s964_s15 = smov [#allocation11]   ;;  %s22_s18 = sshll.u32 %s1046_s0, 4  ;;  %s23_s18 = int_to_ptr.hbm [resolvable:$true] %s22_s18 }
   0xb   :  { %s82_s16 = sshll.u32 %s964_s15, 4  ;;  %s965_s19 = smov [#allocation2]   ;;  %s83_s16 = int_to_ptr.vmem [resolvable:$true] %s82_s16 }
   0xc   :  { %88 = dma.hbm_to_vmem [thread:$0]  %s81_s14, 8192, %s83_s16, [#allocation12], %s962_s11, %s962_s11, %s963_s12  }
   0xd   :  { %s24_s20 = sshll.u32 %s965_s19, 4  ;;  %s44_s23 = sshll.u32 %s1048_s2, 4  ;;  %s25_s20 = int_to_ptr.vmem [resolvable:$true] %s24_s20  ;;  %s45_s23 = int_to_ptr.hbm [resolvable:$true] %s44_s23 }
   0xe   :  { %27 = dma.hbm_to_vmem [thread:$0]  %s23_s18, 256, %s25_s20, [#allocation3]  }
   0xf   :  { %s67_s25 = sshll.u32 %s1050_s4, 4  ;;  %s966_s26 = smov [#allocation7]   ;;  %s68_s25 = int_to_ptr.hbm [resolvable:$true] %s67_s25 }
  0x10   :  { %s46_s0 = sshll.u32 %s966_s26, 4  ;;  %s967_s27 = smov [#allocation10]   ;;  %s47_s0 = int_to_ptr.vmem [resolvable:$true] %s46_s0 }
  0x11   :  { %49 = dma.hbm_to_vmem [thread:$0]  %s45_s23, 256, %s47_s0, [#allocation6]  }
  0x12   :  { %s69_s28 = sshll.u32 %s967_s27, 4  ;;  %s93_s8 = sshll.u32 %s1052_s6, 4  ;;  %s70_s28 = int_to_ptr.vmem [resolvable:$true] %s69_s28  ;;  %s94_s8 = int_to_ptr.hbm [resolvable:$true] %s93_s8 }
  0x13   :  { %75 = dma.hbm_to_vmem [thread:$0]  %s68_s25, 8192, %s70_s28, [#allocation9], %s962_s11, %s962_s11, %s963_s12  }
  0x14   :  { %s968_s2 = smov [#allocation13]  }
  0x15   :  { %s95_s9 = sshll.u32 %s968_s2, 4  ;;  %s96_s9 = int_to_ptr.vmem [resolvable:$true] %s95_s9 }
  0x16   :  { %101 = dma.hbm_to_vmem [thread:$0]  %s94_s8, 8192, %s96_s9, [#allocation12], %s962_s11, %s962_s11, %s963_s12  }
  0x17   :  { %950 = dma.done.wait [#allocation3], 256  }
  0x18   :  { %951 = vsyncadd [#allocation3], 4294967040 }
  0x19   :  { %952 = dma.done.wait [#allocation6], 512  }
  0x1a   :  { %953 = vsyncadd [#allocation6], 4294966784 }
  0x1b   :  { %954 = dma.done.wait [#allocation9], 16384  }
  0x1c   :  { %955 = vsyncadd [#allocation9], 4294950912 }
  0x1d   :  { %956 = dma.done.wait [#allocation12], 16384  }
  0x1e   :  { %957 = vsyncadd [#allocation12], 4294950912  ;;  %v166_v0 = vld [vmem:[#allocation8 + $0xf0] sm:$0xff]  ;;  %v167_v2 = vld [vmem:[#allocation8 + $0xf8] sm:$0xff]  ;;  %s969_s4 = smov [#allocation14]   ;;  %s735_s12 = sshll.u32 %s1053_s7, 4  ;;  %s736_s12 = int_to_ptr.hbm [resolvable:$true] %s735_s12 }
  0x1f   :  { %v198_v1 = vld [vmem:[#allocation8 + $0x1f0] sm:$0xff]  ;;  %200 = vmatpush.msra.mxu0 %v166_v0  ;;  %v199_v3 = vld [vmem:[#allocation8 + $0x1f8] sm:$0xff]  ;;  %v164_v4 = vld [vmem:[#allocation8 + $0xe0] sm:$0xff]  ;;  %240 = vmatpush.msra.mxu2 %v167_v2  ;;  %s733_s6 = sshll.u32 %s969_s4, 4  ;;  %s734_s6 = int_to_ptr.vmem [resolvable:$true] %s733_s6 }
  0x20   :  { %220 = vmatpush.msra.mxu1 %v198_v1  ;;  %v196_v5 = vld [vmem:[#allocation8 + $0x1e0] sm:$0xff]  ;;  %260 = vmatpush.msra.mxu3 %v199_v3  ;;  %v165_v6 = vld [vmem:[#allocation8 + $0xe8] sm:$0xff]  ;;  %v162_v8 = vld [vmem:[#allocation8 + $0xd0] sm:$0xff] }
  0x21   :  { %v197_v7 = vld [vmem:[#allocation8 + $0x1e8] sm:$0xff]  ;;  %201 = vmatpush.msra.mxu0 %v164_v4  ;;  %v194_v9 = vld [vmem:[#allocation8 + $0x1d0] sm:$0xff]  ;;  %v163_v10 = vld [vmem:[#allocation8 + $0xd8] sm:$0xff]  ;;  %241 = vmatpush.msra.mxu2 %v165_v6 }
  0x22   :  { %221 = vmatpush.msra.mxu1 %v196_v5  ;;  %v195_v11 = vld [vmem:[#allocation8 + $0x1d8] sm:$0xff]  ;;  %261 = vmatpush.msra.mxu3 %v197_v7  ;;  %v160_v12 = vld [vmem:[#allocation8 + $0xc0] sm:$0xff]  ;;  %v161_v14 = vld [vmem:[#allocation8 + $0xc8] sm:$0xff] }
  0x23   :  { %v192_v13 = vld [vmem:[#allocation8 + $0x1c0] sm:$0xff]  ;;  %202 = vmatpush.msra.mxu0 %v162_v8  ;;  %v193_v15 = vld [vmem:[#allocation8 + $0x1c8] sm:$0xff]  ;;  %242 = vmatpush.msra.mxu2 %v163_v10  ;;  %v158_v16 = vld [vmem:[#allocation8 + $0xb0] sm:$0xff] }
  0x24   :  { %222 = vmatpush.msra.mxu1 %v194_v9  ;;  %262 = vmatpush.msra.mxu3 %v195_v11  ;;  %v190_v17 = vld [vmem:[#allocation8 + $0x1b0] sm:$0xff]  ;;  %v159_v18 = vld [vmem:[#allocation8 + $0xb8] sm:$0xff]  ;;  %v156_v20 = vld [vmem:[#allocation8 + $0xa0] sm:$0xff] }
  0x25   :  { %203 = vmatpush.msra.mxu0 %v160_v12  ;;  %v191_v19 = vld [vmem:[#allocation8 + $0x1b8] sm:$0xff]  ;;  %243 = vmatpush.msra.mxu2 %v161_v14  ;;  %v188_v21 = vld [vmem:[#allocation8 + $0x1a0] sm:$0xff]  ;;  %v157_v22 = vld [vmem:[#allocation8 + $0xa8] sm:$0xff] }
  0x26   :  { %223 = vmatpush.msra.mxu1 %v192_v13  ;;  %263 = vmatpush.msra.mxu3 %v193_v15  ;;  %v189_v23 = vld [vmem:[#allocation8 + $0x1a8] sm:$0xff]  ;;  %v154_v24 = vld [vmem:[#allocation8 + $0x90] sm:$0xff]  ;;  %v155_v26 = vld [vmem:[#allocation8 + $0x98] sm:$0xff] }
  0x27   :  { %204 = vmatpush.msra.mxu0 %v158_v16  ;;  %244 = vmatpush.msra.mxu2 %v159_v18  ;;  %v186_v25 = vld [vmem:[#allocation8 + $0x190] sm:$0xff]  ;;  %v187_v27 = vld [vmem:[#allocation8 + $0x198] sm:$0xff]  ;;  %v152_v28 = vld [vmem:[#allocation8 + $0x80] sm:$0xff] }
  0x28   :  { %224 = vmatpush.msra.mxu1 %v190_v17  ;;  %264 = vmatpush.msra.mxu3 %v191_v19  ;;  %v184_v29 = vld [vmem:[#allocation8 + $0x180] sm:$0xff]  ;;  %v153_v30 = vld [vmem:[#allocation8 + $0x88] sm:$0xff]  ;;  %v150_v32 = vld [vmem:[#allocation8 + $0x70] sm:$0xff] }
  0x29   :  { %205 = vmatpush.msra.mxu0 %v156_v20  ;;  %245 = vmatpush.msra.mxu2 %v157_v22  ;;  %v185_v31 = vld [vmem:[#allocation8 + $0x188] sm:$0xff]  ;;  %v182_v33 = vld [vmem:[#allocation8 + $0x170] sm:$0xff]  ;;  %v151_v34 = vld [vmem:[#allocation8 + $0x78] sm:$0xff] }
  0x2a   :  { %225 = vmatpush.msra.mxu1 %v188_v21  ;;  %265 = vmatpush.msra.mxu3 %v189_v23  ;;  %v183_v35 = vld [vmem:[#allocation8 + $0x178] sm:$0xff]  ;;  %v148_v36 = vld [vmem:[#allocation8 + $0x60] sm:$0xff]  ;;  %v149_v38 = vld [vmem:[#allocation8 + $0x68] sm:$0xff] }
  0x2b   :  { %206 = vmatpush.msra.mxu0 %v154_v24  ;;  %246 = vmatpush.msra.mxu2 %v155_v26  ;;  %v180_v37 = vld [vmem:[#allocation8 + $0x160] sm:$0xff]  ;;  %v181_v39 = vld [vmem:[#allocation8 + $0x168] sm:$0xff]  ;;  %v146_v40 = vld [vmem:[#allocation8 + $0x50] sm:$0xff] }
  0x2c   :  { %226 = vmatpush.msra.mxu1 %v186_v25  ;;  %266 = vmatpush.msra.mxu3 %v187_v27  ;;  %v178_v41 = vld [vmem:[#allocation8 + $0x150] sm:$0xff]  ;;  %v147_v42 = vld [vmem:[#allocation8 + $0x58] sm:$0xff]  ;;  %v144_v44 = vld [vmem:[#allocation8 + $0x40] sm:$0xff] }
  0x2d   :  { %207 = vmatpush.msra.mxu0 %v152_v28  ;;  %247 = vmatpush.msra.mxu2 %v153_v30  ;;  %v179_v43 = vld [vmem:[#allocation8 + $0x158] sm:$0xff]  ;;  %v176_v45 = vld [vmem:[#allocation8 + $0x140] sm:$0xff]  ;;  %v145_v46 = vld [vmem:[#allocation8 + $0x48] sm:$0xff] }
  0x2e   :  { %227 = vmatpush.msra.mxu1 %v184_v29  ;;  %267 = vmatpush.msra.mxu3 %v185_v31  ;;  %v177_v47 = vld [vmem:[#allocation8 + $0x148] sm:$0xff]  ;;  %v142_v48 = vld [vmem:[#allocation8 + $0x30] sm:$0xff]  ;;  %v143_v50 = vld [vmem:[#allocation8 + $0x38] sm:$0xff] }
  0x2f   :  { %208 = vmatpush.msra.mxu0 %v150_v32  ;;  %248 = vmatpush.msra.mxu2 %v151_v34  ;;  %v174_v49 = vld [vmem:[#allocation8 + $0x130] sm:$0xff]  ;;  %v175_v51 = vld [vmem:[#allocation8 + $0x138] sm:$0xff]  ;;  %v140_v52 = vld [vmem:[#allocation8 + $0x20] sm:$0xff] }
  0x30   :  { %228 = vmatpush.msra.mxu1 %v182_v33  ;;  %268 = vmatpush.msra.mxu3 %v183_v35  ;;  %v172_v53 = vld [vmem:[#allocation8 + $0x120] sm:$0xff]  ;;  %v141_v54 = vld [vmem:[#allocation8 + $0x28] sm:$0xff]  ;;  %v138_v56 = vld [vmem:[#allocation8 + $0x10] sm:$0xff] }
  0x31   :  { %209 = vmatpush.msra.mxu0 %v148_v36  ;;  %249 = vmatpush.msra.mxu2 %v149_v38  ;;  %v173_v55 = vld [vmem:[#allocation8 + $0x128] sm:$0xff]  ;;  %v170_v57 = vld [vmem:[#allocation8 + $0x110] sm:$0xff]  ;;  %v139_v58 = vld [vmem:[#allocation8 + $0x18] sm:$0xff] }
  0x32   :  { %229 = vmatpush.msra.mxu1 %v180_v37  ;;  %269 = vmatpush.msra.mxu3 %v181_v39  ;;  %v171_v59 = vld [vmem:[#allocation8 + $0x118] sm:$0xff]  ;;  %v136_v60 = vld [vmem:[#allocation8] sm:$0xff]  ;;  %v137_v62 = vld [vmem:[#allocation8 + $0x8] sm:$0xff] }
  0x33   :  { %210 = vmatpush.msra.mxu0 %v146_v40  ;;  %250 = vmatpush.msra.mxu2 %v147_v42  ;;  %v168_v61 = vld [vmem:[#allocation8 + $0x100] sm:$0xff]  ;;  %v169_v63 = vld [vmem:[#allocation8 + $0x108] sm:$0xff]  ;;  %v310_v0 = vld [vmem:[#allocation10 + $0xf0] sm:$0xff] }
  0x34   :  { %230 = vmatpush.msra.mxu1 %v178_v41  ;;  %270 = vmatpush.msra.mxu3 %v179_v43  ;;  %v342_v1 = vld [vmem:[#allocation10 + $0x1f0] sm:$0xff]  ;;  %v311_v2 = vld [vmem:[#allocation10 + $0xf8] sm:$0xff]  ;;  %v308_v4 = vld [vmem:[#allocation10 + $0xe0] sm:$0xff] }
  0x35   :  { %211 = vmatpush.msra.mxu0 %v144_v44  ;;  %251 = vmatpush.msra.mxu2 %v145_v46  ;;  %v343_v3 = vld [vmem:[#allocation10 + $0x1f8] sm:$0xff]  ;;  %v340_v5 = vld [vmem:[#allocation10 + $0x1e0] sm:$0xff]  ;;  %v309_v6 = vld [vmem:[#allocation10 + $0xe8] sm:$0xff] }
  0x36   :  { %231 = vmatpush.msra.mxu1 %v176_v45  ;;  %271 = vmatpush.msra.mxu3 %v177_v47  ;;  %v341_v7 = vld [vmem:[#allocation10 + $0x1e8] sm:$0xff]  ;;  %v306_v8 = vld [vmem:[#allocation10 + $0xd0] sm:$0xff]  ;;  %v307_v10 = vld [vmem:[#allocation10 + $0xd8] sm:$0xff] }
  0x37   :  { %212 = vmatpush.msra.mxu0 %v142_v48  ;;  %252 = vmatpush.msra.mxu2 %v143_v50  ;;  %v338_v9 = vld [vmem:[#allocation10 + $0x1d0] sm:$0xff]  ;;  %v339_v11 = vld [vmem:[#allocation10 + $0x1d8] sm:$0xff]  ;;  %v304_v12 = vld [vmem:[#allocation10 + $0xc0] sm:$0xff] }
  0x38   :  { %232 = vmatpush.msra.mxu1 %v174_v49  ;;  %272 = vmatpush.msra.mxu3 %v175_v51  ;;  %v336_v13 = vld [vmem:[#allocation10 + $0x1c0] sm:$0xff]  ;;  %v305_v14 = vld [vmem:[#allocation10 + $0xc8] sm:$0xff]  ;;  %v302_v16 = vld [vmem:[#allocation10 + $0xb0] sm:$0xff] }
  0x39   :  { %213 = vmatpush.msra.mxu0 %v140_v52  ;;  %253 = vmatpush.msra.mxu2 %v141_v54  ;;  %v337_v15 = vld [vmem:[#allocation10 + $0x1c8] sm:$0xff]  ;;  %v334_v17 = vld [vmem:[#allocation10 + $0x1b0] sm:$0xff]  ;;  %v303_v18 = vld [vmem:[#allocation10 + $0xb8] sm:$0xff] }
  0x3a   :  { %233 = vmatpush.msra.mxu1 %v172_v53  ;;  %273 = vmatpush.msra.mxu3 %v173_v55  ;;  %v335_v19 = vld [vmem:[#allocation10 + $0x1b8] sm:$0xff]  ;;  %v300_v20 = vld [vmem:[#allocation10 + $0xa0] sm:$0xff]  ;;  %v301_v22 = vld [vmem:[#allocation10 + $0xa8] sm:$0xff] }
  0x3b   :  { %214 = vmatpush.msra.mxu0 %v138_v56  ;;  %254 = vmatpush.msra.mxu2 %v139_v58  ;;  %v332_v21 = vld [vmem:[#allocation10 + $0x1a0] sm:$0xff]  ;;  %v333_v23 = vld [vmem:[#allocation10 + $0x1a8] sm:$0xff]  ;;  %v298_v24 = vld [vmem:[#allocation10 + $0x90] sm:$0xff] }
  0x3c   :  { %234 = vmatpush.msra.mxu1 %v170_v57  ;;  %274 = vmatpush.msra.mxu3 %v171_v59  ;;  %v330_v25 = vld [vmem:[#allocation10 + $0x190] sm:$0xff]  ;;  %v299_v26 = vld [vmem:[#allocation10 + $0x98] sm:$0xff]  ;;  %v296_v28 = vld [vmem:[#allocation10 + $0x80] sm:$0xff] }
  0x3d   :  { %215 = vmatpush.msra.mxu0 %v136_v60  ;;  %255 = vmatpush.msra.mxu2 %v137_v62  ;;  %v331_v27 = vld [vmem:[#allocation10 + $0x198] sm:$0xff]  ;;  %v328_v29 = vld [vmem:[#allocation10 + $0x180] sm:$0xff]  ;;  %v297_v30 = vld [vmem:[#allocation10 + $0x88] sm:$0xff] }
  0x3e   :  { %235 = vmatpush.msra.mxu1 %v168_v61  ;;  %275 = vmatpush.msra.mxu3 %v169_v63  ;;  %v329_v31 = vld [vmem:[#allocation10 + $0x188] sm:$0xff]  ;;  %v294_v32 = vld [vmem:[#allocation10 + $0x70] sm:$0xff]  ;;  %v295_v34 = vld [vmem:[#allocation10 + $0x78] sm:$0xff] }
  0x3f   :  { %344 = vmatpush.msrb.mxu0 %v310_v0  ;;  %384 = vmatpush.msrb.mxu2 %v311_v2  ;;  %v326_v33 = vld [vmem:[#allocation10 + $0x170] sm:$0xff]  ;;  %v327_v35 = vld [vmem:[#allocation10 + $0x178] sm:$0xff]  ;;  %v292_v36 = vld [vmem:[#allocation10 + $0x60] sm:$0xff] }
  0x40   :  { %364 = vmatpush.msrb.mxu1 %v342_v1  ;;  %404 = vmatpush.msrb.mxu3 %v343_v3  ;;  %v324_v37 = vld [vmem:[#allocation10 + $0x160] sm:$0xff]  ;;  %v293_v38 = vld [vmem:[#allocation10 + $0x68] sm:$0xff]  ;;  %v290_v40 = vld [vmem:[#allocation10 + $0x50] sm:$0xff] }
  0x41   :  { %345 = vmatpush.msrb.mxu0 %v308_v4  ;;  %385 = vmatpush.msrb.mxu2 %v309_v6  ;;  %v325_v39 = vld [vmem:[#allocation10 + $0x168] sm:$0xff]  ;;  %v322_v41 = vld [vmem:[#allocation10 + $0x150] sm:$0xff]  ;;  %v291_v42 = vld [vmem:[#allocation10 + $0x58] sm:$0xff] }
  0x42   :  { %365 = vmatpush.msrb.mxu1 %v340_v5  ;;  %405 = vmatpush.msrb.mxu3 %v341_v7  ;;  %v323_v43 = vld [vmem:[#allocation10 + $0x158] sm:$0xff]  ;;  %v288_v44 = vld [vmem:[#allocation10 + $0x40] sm:$0xff]  ;;  %v289_v46 = vld [vmem:[#allocation10 + $0x48] sm:$0xff] }
  0x43   :  { %346 = vmatpush.msrb.mxu0 %v306_v8  ;;  %386 = vmatpush.msrb.mxu2 %v307_v10  ;;  %v320_v45 = vld [vmem:[#allocation10 + $0x140] sm:$0xff]  ;;  %v321_v47 = vld [vmem:[#allocation10 + $0x148] sm:$0xff]  ;;  %v130_v48 = vld [vmem:[#allocation2] sm:$0xff] }
  0x44   :  { %366 = vmatpush.msrb.mxu1 %v338_v9  ;;  %406 = vmatpush.msrb.mxu3 %v339_v11  ;;  %v131_v49 = vld [vmem:[#allocation2 + $0x8] sm:$0xff]  ;;  %v286_v50 = vld [vmem:[#allocation10 + $0x30] sm:$0xff]  ;;  %v284_v54 = vld [vmem:[#allocation10 + $0x20] sm:$0xff] }
  0x45   :  { %347 = vmatpush.msrb.mxu0 %v304_v12  ;;  %387 = vmatpush.msrb.mxu2 %v305_v14  ;;  %v318_v51 = vld [vmem:[#allocation10 + $0x130] sm:$0xff]  ;;  %v287_v52 = vld [vmem:[#allocation10 + $0x38] sm:$0xff]  ;;  %v316_v55 = vld [vmem:[#allocation10 + $0x120] sm:$0xff] }
  0x46   :  { %367 = vmatpush.msrb.mxu1 %v336_v13  ;;  %407 = vmatpush.msrb.mxu3 %v337_v15  ;;  %v319_v53 = vld [vmem:[#allocation10 + $0x138] sm:$0xff]  ;;  %v285_v56 = vld [vmem:[#allocation10 + $0x28] sm:$0xff]  ;;  %v282_v58 = vld [vmem:[#allocation10 + $0x10] sm:$0xff] }
  0x47   :  { %348 = vmatpush.msrb.mxu0 %v302_v16  ;;  %388 = vmatpush.msrb.mxu2 %v303_v18  ;;  %v317_v57 = vld [vmem:[#allocation10 + $0x128] sm:$0xff]  ;;  %v314_v59 = vld [vmem:[#allocation10 + $0x110] sm:$0xff]  ;;  %v283_v60 = vld [vmem:[#allocation10 + $0x18] sm:$0xff] }
  0x48   :  { %368 = vmatpush.msrb.mxu1 %v334_v17  ;;  %408 = vmatpush.msrb.mxu3 %v335_v19  ;;  %v315_v61 = vld [vmem:[#allocation10 + $0x118] sm:$0xff]  ;;  %v280_v62 = vld [vmem:[#allocation10] sm:$0xff]  ;;  %v281_v0 = vld [vmem:[#allocation10 + $0x8] sm:$0xff] }
  0x49   :  { %349 = vmatpush.msrb.mxu0 %v300_v20  ;;  %389 = vmatpush.msrb.mxu2 %v301_v22  ;;  %v312_v63 = vld [vmem:[#allocation10 + $0x100] sm:$0xff]  ;;  %v313_v1 = vld [vmem:[#allocation10 + $0x108] sm:$0xff]  ;;  %v466_v2 = vld [vmem:[#allocation11 + $0xf0] sm:$0xff] }
  0x4a   :  { %369 = vmatpush.msrb.mxu1 %v332_v21  ;;  %409 = vmatpush.msrb.mxu3 %v333_v23  ;;  %v467_v3 = vld [vmem:[#allocation11 + $0xf8] sm:$0xff]  ;;  %v498_v4 = vld [vmem:[#allocation11 + $0x1f0] sm:$0xff]  ;;  %v464_v6 = vld [vmem:[#allocation11 + $0xe0] sm:$0xff] }
  0x4b   :  { %350 = vmatpush.msrb.mxu0 %v298_v24  ;;  %390 = vmatpush.msrb.mxu2 %v299_v26  ;;  %v499_v5 = vld [vmem:[#allocation11 + $0x1f8] sm:$0xff]  ;;  %v465_v7 = vld [vmem:[#allocation11 + $0xe8] sm:$0xff]  ;;  %v496_v8 = vld [vmem:[#allocation11 + $0x1e0] sm:$0xff] }
  0x4c   :  { %370 = vmatpush.msrb.mxu1 %v330_v25  ;;  %410 = vmatpush.msrb.mxu3 %v331_v27  ;;  %v497_v9 = vld [vmem:[#allocation11 + $0x1e8] sm:$0xff]  ;;  %v462_v10 = vld [vmem:[#allocation11 + $0xd0] sm:$0xff]  ;;  %v463_v11 = vld [vmem:[#allocation11 + $0xd8] sm:$0xff] }
  0x4d   :  { %351 = vmatpush.msrb.mxu0 %v296_v28  ;;  %391 = vmatpush.msrb.mxu2 %v297_v30  ;;  %v494_v12 = vld [vmem:[#allocation11 + $0x1d0] sm:$0xff]  ;;  %v495_v13 = vld [vmem:[#allocation11 + $0x1d8] sm:$0xff]  ;;  %v460_v14 = vld [vmem:[#allocation11 + $0xc0] sm:$0xff] }
  0x4e   :  { %371 = vmatpush.msrb.mxu1 %v328_v29  ;;  %411 = vmatpush.msrb.mxu3 %v329_v31  ;;  %v461_v15 = vld [vmem:[#allocation11 + $0xc8] sm:$0xff]  ;;  %v492_v16 = vld [vmem:[#allocation11 + $0x1c0] sm:$0xff]  ;;  %v458_v18 = vld [vmem:[#allocation11 + $0xb0] sm:$0xff] }
  0x4f   :  { %352 = vmatpush.msrb.mxu0 %v294_v32  ;;  %392 = vmatpush.msrb.mxu2 %v295_v34  ;;  %v493_v17 = vld [vmem:[#allocation11 + $0x1c8] sm:$0xff]  ;;  %v459_v19 = vld [vmem:[#allocation11 + $0xb8] sm:$0xff]  ;;  %v490_v20 = vld [vmem:[#allocation11 + $0x1b0] sm:$0xff] }
  0x50   :  { %372 = vmatpush.msrb.mxu1 %v326_v33  ;;  %412 = vmatpush.msrb.mxu3 %v327_v35  ;;  %v491_v21 = vld [vmem:[#allocation11 + $0x1b8] sm:$0xff]  ;;  %v456_v22 = vld [vmem:[#allocation11 + $0xa0] sm:$0xff]  ;;  %v457_v23 = vld [vmem:[#allocation11 + $0xa8] sm:$0xff] }
  0x51   :  { %353 = vmatpush.msrb.mxu0 %v292_v36  ;;  %393 = vmatpush.msrb.mxu2 %v293_v38  ;;  %v488_v24 = vld [vmem:[#allocation11 + $0x1a0] sm:$0xff]  ;;  %v489_v25 = vld [vmem:[#allocation11 + $0x1a8] sm:$0xff]  ;;  %v454_v26 = vld [vmem:[#allocation11 + $0x90] sm:$0xff] }
  0x52   :  { %373 = vmatpush.msrb.mxu1 %v324_v37  ;;  %413 = vmatpush.msrb.mxu3 %v325_v39  ;;  %v455_v27 = vld [vmem:[#allocation11 + $0x98] sm:$0xff]  ;;  %v486_v28 = vld [vmem:[#allocation11 + $0x190] sm:$0xff]  ;;  %v452_v30 = vld [vmem:[#allocation11 + $0x80] sm:$0xff] }
  0x53   :  { %354 = vmatpush.msrb.mxu0 %v290_v40  ;;  %394 = vmatpush.msrb.mxu2 %v291_v42  ;;  %v487_v29 = vld [vmem:[#allocation11 + $0x198] sm:$0xff]  ;;  %v453_v31 = vld [vmem:[#allocation11 + $0x88] sm:$0xff]  ;;  %v484_v32 = vld [vmem:[#allocation11 + $0x180] sm:$0xff] }
  0x54   :  { %374 = vmatpush.msrb.mxu1 %v322_v41  ;;  %414 = vmatpush.msrb.mxu3 %v323_v43  ;;  %v485_v33 = vld [vmem:[#allocation11 + $0x188] sm:$0xff]  ;;  %v450_v34 = vld [vmem:[#allocation11 + $0x70] sm:$0xff]  ;;  %v451_v35 = vld [vmem:[#allocation11 + $0x78] sm:$0xff] }
  0x55   :  { %355 = vmatpush.msrb.mxu0 %v288_v44  ;;  %395 = vmatpush.msrb.mxu2 %v289_v46  ;;  %v482_v36 = vld [vmem:[#allocation11 + $0x170] sm:$0xff]  ;;  %v483_v37 = vld [vmem:[#allocation11 + $0x178] sm:$0xff]  ;;  %v448_v38 = vld [vmem:[#allocation11 + $0x60] sm:$0xff] }
  0x56   :  { %375 = vmatpush.msrb.mxu1 %v320_v45  ;;  %415 = vmatpush.msrb.mxu3 %v321_v47  ;;  %v449_v39 = vld [vmem:[#allocation11 + $0x68] sm:$0xff]  ;;  %v480_v40 = vld [vmem:[#allocation11 + $0x160] sm:$0xff]  ;;  %v446_v42 = vld [vmem:[#allocation11 + $0x50] sm:$0xff] }
  0x57   :  { %216 = vmatmul.f32.vlgmr.msra.gmra.mxu0 %v130_v48  ;;  %236 = vmatmul.f32.vlgmr.msra.gmra.mxu1 %v131_v49  ;;  %v481_v41 = vld [vmem:[#allocation11 + $0x168] sm:$0xff]  ;;  %v447_v43 = vld [vmem:[#allocation11 + $0x58] sm:$0xff]  ;;  %v478_v44 = vld [vmem:[#allocation11 + $0x150] sm:$0xff] }
  0x58   :  { %256 = vmatmul.f32.vlgmr.msra.gmra.mxu2 %v130_v48  ;;  %276 = vmatmul.f32.vlgmr.msra.gmra.mxu3 %v131_v49  ;;  %v479_v45 = vld [vmem:[#allocation11 + $0x158] sm:$0xff]  ;;  %v444_v46 = vld [vmem:[#allocation11 + $0x40] sm:$0xff]  ;;  %v445_v47 = vld [vmem:[#allocation11 + $0x48] sm:$0xff] }
  0x59   :  { %356 = vmatpush.msrb.mxu0 %v286_v50  ;;  %376 = vmatpush.msrb.mxu1 %v318_v51  ;;  %v442_v50 = vld [vmem:[#allocation11 + $0x30] sm:$0xff]  ;;  %v443_v51 = vld [vmem:[#allocation11 + $0x38] sm:$0xff] }
  0x5a   :  { %396 = vmatpush.msrb.mxu2 %v287_v52  ;;  %416 = vmatpush.msrb.mxu3 %v319_v53  ;;  %v474_v52 = vld [vmem:[#allocation11 + $0x130] sm:$0xff]  ;;  %v475_v53 = vld [vmem:[#allocation11 + $0x138] sm:$0xff] }
  0x5b   :  { %357 = vmatpush.msrb.mxu0 %v284_v54  ;;  %377 = vmatpush.msrb.mxu1 %v316_v55  ;;  %v440_v54 = vld [vmem:[#allocation11 + $0x20] sm:$0xff]  ;;  %v441_v55 = vld [vmem:[#allocation11 + $0x28] sm:$0xff] }
  0x5c   :  { %397 = vmatpush.msrb.mxu2 %v285_v56  ;;  %417 = vmatpush.msrb.mxu3 %v317_v57  ;;  %v472_v56 = vld [vmem:[#allocation11 + $0x120] sm:$0xff]  ;;  %v473_v57 = vld [vmem:[#allocation11 + $0x128] sm:$0xff] }
  0x5d   :  { %358 = vmatpush.msrb.mxu0 %v282_v58  ;;  %378 = vmatpush.msrb.mxu1 %v314_v59  ;;  %v438_v58 = vld [vmem:[#allocation11 + $0x10] sm:$0xff]  ;;  %v439_v59 = vld [vmem:[#allocation11 + $0x18] sm:$0xff] }
  0x5e   :  { %398 = vmatpush.msrb.mxu2 %v283_v60  ;;  %418 = vmatpush.msrb.mxu3 %v315_v61  ;;  %v470_v60 = vld [vmem:[#allocation11 + $0x110] sm:$0xff]  ;;  %v471_v61 = vld [vmem:[#allocation11 + $0x118] sm:$0xff] }
  0x5f   :  { %359 = vmatpush.msrb.mxu0 %v280_v62  ;;  %379 = vmatpush.msrb.mxu1 %v312_v63  ;;  %v436_v62 = vld [vmem:[#allocation11] sm:$0xff]  ;;  %v437_v63 = vld [vmem:[#allocation11 + $0x8] sm:$0xff] }
  0x60   :  { %399 = vmatpush.msrb.mxu2 %v281_v0  ;;  %419 = vmatpush.msrb.mxu3 %v313_v1  ;;  %v610_v0 = vld [vmem:[#allocation13 + $0xf0] sm:$0xff]  ;;  %v611_v1 = vld [vmem:[#allocation13 + $0xf8] sm:$0xff] }
  0x61   :  { %360 = vmatmul.f32.vlgmr.msrb.gmra.mxu0 %v130_v48  ;;  %380 = vmatmul.f32.vlgmr.msrb.gmra.mxu1 %v131_v49 }
  0x62   :  { %400 = vmatmul.f32.vlgmr.msrb.gmra.mxu2 %v130_v48  ;;  %420 = vmatmul.f32.vlgmr.msrb.gmra.mxu3 %v131_v49  ;;  %v476_v48 = vld [vmem:[#allocation11 + $0x140] sm:$0xff]  ;;  %v477_v49 = vld [vmem:[#allocation11 + $0x148] sm:$0xff] }
  0x63   :  { %500 = vmatpush.msra.mxu0 %v466_v2  ;;  %540 = vmatpush.msra.mxu2 %v467_v3  ;;  %v468_v2 = vld [vmem:[#allocation11 + $0x100] sm:$0xff]  ;;  %v469_v3 = vld [vmem:[#allocation11 + $0x108] sm:$0xff] }
  0x64   :  { %520 = vmatpush.msra.mxu1 %v498_v4  ;;  %560 = vmatpush.msra.mxu3 %v499_v5  ;;  %v608_v4 = vld [vmem:[#allocation13 + $0xe0] sm:$0xff]  ;;  %v609_v5 = vld [vmem:[#allocation13 + $0xe8] sm:$0xff] }
  0x65   :  { %501 = vmatpush.msra.mxu0 %v464_v6  ;;  %541 = vmatpush.msra.mxu2 %v465_v7  ;;  %v642_v6 = vld [vmem:[#allocation13 + $0x1f0] sm:$0xff]  ;;  %v643_v7 = vld [vmem:[#allocation13 + $0x1f8] sm:$0xff] }
  0x66   :  { %521 = vmatpush.msra.mxu1 %v496_v8  ;;  %561 = vmatpush.msra.mxu3 %v497_v9  ;;  %v606_v8 = vld [vmem:[#allocation13 + $0xd0] sm:$0xff]  ;;  %v607_v9 = vld [vmem:[#allocation13 + $0xd8] sm:$0xff] }
  0x67   :  { %502 = vmatpush.msra.mxu0 %v462_v10  ;;  %542 = vmatpush.msra.mxu2 %v463_v11  ;;  %v604_v10 = vld [vmem:[#allocation13 + $0xc0] sm:$0xff]  ;;  %v605_v11 = vld [vmem:[#allocation13 + $0xc8] sm:$0xff] }
  0x68   :  { %522 = vmatpush.msra.mxu1 %v494_v12  ;;  %562 = vmatpush.msra.mxu3 %v495_v13  ;;  %v602_v12 = vld [vmem:[#allocation13 + $0xb0] sm:$0xff]  ;;  %v640_v13 = vld [vmem:[#allocation13 + $0x1e0] sm:$0xff] }
  0x69   :  { %503 = vmatpush.msra.mxu0 %v460_v14  ;;  %543 = vmatpush.msra.mxu2 %v461_v15  ;;  %v603_v14 = vld [vmem:[#allocation13 + $0xb8] sm:$0xff]  ;;  %v641_v15 = vld [vmem:[#allocation13 + $0x1e8] sm:$0xff] }
  0x6a   :  { %523 = vmatpush.msra.mxu1 %v492_v16  ;;  %563 = vmatpush.msra.mxu3 %v493_v17  ;;  %v600_v16 = vld [vmem:[#allocation13 + $0xa0] sm:$0xff]  ;;  %v638_v17 = vld [vmem:[#allocation13 + $0x1d0] sm:$0xff] }
  0x6b   :  { %504 = vmatpush.msra.mxu0 %v458_v18  ;;  %544 = vmatpush.msra.mxu2 %v459_v19  ;;  %v601_v18 = vld [vmem:[#allocation13 + $0xa8] sm:$0xff]  ;;  %v639_v19 = vld [vmem:[#allocation13 + $0x1d8] sm:$0xff] }
  0x6c   :  { %524 = vmatpush.msra.mxu1 %v490_v20  ;;  %564 = vmatpush.msra.mxu3 %v491_v21  ;;  %v598_v20 = vld [vmem:[#allocation13 + $0x90] sm:$0xff]  ;;  %v636_v21 = vld [vmem:[#allocation13 + $0x1c0] sm:$0xff] }
  0x6d   :  { %505 = vmatpush.msra.mxu0 %v456_v22  ;;  %545 = vmatpush.msra.mxu2 %v457_v23  ;;  %v599_v22 = vld [vmem:[#allocation13 + $0x98] sm:$0xff]  ;;  %v637_v23 = vld [vmem:[#allocation13 + $0x1c8] sm:$0xff] }
  0x6e   :  { %525 = vmatpush.msra.mxu1 %v488_v24  ;;  %565 = vmatpush.msra.mxu3 %v489_v25  ;;  %v596_v24 = vld [vmem:[#allocation13 + $0x80] sm:$0xff]  ;;  %v634_v25 = vld [vmem:[#allocation13 + $0x1b0] sm:$0xff] }
  0x6f   :  { %506 = vmatpush.msra.mxu0 %v454_v26  ;;  %546 = vmatpush.msra.mxu2 %v455_v27  ;;  %v597_v26 = vld [vmem:[#allocation13 + $0x88] sm:$0xff]  ;;  %v635_v27 = vld [vmem:[#allocation13 + $0x1b8] sm:$0xff] }
  0x70   :  { %526 = vmatpush.msra.mxu1 %v486_v28  ;;  %566 = vmatpush.msra.mxu3 %v487_v29  ;;  %v594_v28 = vld [vmem:[#allocation13 + $0x70] sm:$0xff]  ;;  %v632_v29 = vld [vmem:[#allocation13 + $0x1a0] sm:$0xff] }
  0x71   :  { %507 = vmatpush.msra.mxu0 %v452_v30  ;;  %547 = vmatpush.msra.mxu2 %v453_v31  ;;  %v595_v30 = vld [vmem:[#allocation13 + $0x78] sm:$0xff]  ;;  %v633_v31 = vld [vmem:[#allocation13 + $0x1a8] sm:$0xff] }
  0x72   :  { %527 = vmatpush.msra.mxu1 %v484_v32  ;;  %567 = vmatpush.msra.mxu3 %v485_v33  ;;  %v592_v32 = vld [vmem:[#allocation13 + $0x60] sm:$0xff]  ;;  %v630_v33 = vld [vmem:[#allocation13 + $0x190] sm:$0xff] }
  0x73   :  { %508 = vmatpush.msra.mxu0 %v450_v34  ;;  %548 = vmatpush.msra.mxu2 %v451_v35  ;;  %v593_v34 = vld [vmem:[#allocation13 + $0x68] sm:$0xff]  ;;  %v631_v35 = vld [vmem:[#allocation13 + $0x198] sm:$0xff] }
  0x74   :  { %528 = vmatpush.msra.mxu1 %v482_v36  ;;  %568 = vmatpush.msra.mxu3 %v483_v37  ;;  %v590_v36 = vld [vmem:[#allocation13 + $0x50] sm:$0xff]  ;;  %v628_v37 = vld [vmem:[#allocation13 + $0x180] sm:$0xff] }
  0x75   :  { %509 = vmatpush.msra.mxu0 %v448_v38  ;;  %549 = vmatpush.msra.mxu2 %v449_v39  ;;  %v591_v38 = vld [vmem:[#allocation13 + $0x58] sm:$0xff]  ;;  %v629_v39 = vld [vmem:[#allocation13 + $0x188] sm:$0xff] }
  0x76   :  { %529 = vmatpush.msra.mxu1 %v480_v40  ;;  %569 = vmatpush.msra.mxu3 %v481_v41  ;;  %v588_v40 = vld [vmem:[#allocation13 + $0x40] sm:$0xff]  ;;  %v626_v41 = vld [vmem:[#allocation13 + $0x170] sm:$0xff] }
  0x77   :  { %510 = vmatpush.msra.mxu0 %v446_v42  ;;  %550 = vmatpush.msra.mxu2 %v447_v43  ;;  %v589_v42 = vld [vmem:[#allocation13 + $0x48] sm:$0xff]  ;;  %v627_v43 = vld [vmem:[#allocation13 + $0x178] sm:$0xff] }
  0x78   :  { %530 = vmatpush.msra.mxu1 %v478_v44  ;;  %570 = vmatpush.msra.mxu3 %v479_v45  ;;  %v586_v44 = vld [vmem:[#allocation13 + $0x30] sm:$0xff]  ;;  %v624_v45 = vld [vmem:[#allocation13 + $0x160] sm:$0xff] }
  0x79   :  { %511 = vmatpush.msra.mxu0 %v444_v46  ;;  %551 = vmatpush.msra.mxu2 %v445_v47  ;;  %v587_v46 = vld [vmem:[#allocation13 + $0x38] sm:$0xff]  ;;  %v625_v47 = vld [vmem:[#allocation13 + $0x168] sm:$0xff] }
  0x7a   :  { %531 = vmatpush.msra.mxu1 %v476_v48  ;;  %571 = vmatpush.msra.mxu3 %v477_v49  ;;  %v584_v48 = vld [vmem:[#allocation13 + $0x20] sm:$0xff]  ;;  %v622_v49 = vld [vmem:[#allocation13 + $0x150] sm:$0xff] }
  0x7b   :  { %512 = vmatpush.msra.mxu0 %v442_v50  ;;  %552 = vmatpush.msra.mxu2 %v443_v51  ;;  %v585_v50 = vld [vmem:[#allocation13 + $0x28] sm:$0xff]  ;;  %v623_v51 = vld [vmem:[#allocation13 + $0x158] sm:$0xff] }
  0x7c   :  { %532 = vmatpush.msra.mxu1 %v474_v52  ;;  %572 = vmatpush.msra.mxu3 %v475_v53  ;;  %v582_v52 = vld [vmem:[#allocation13 + $0x10] sm:$0xff]  ;;  %v620_v53 = vld [vmem:[#allocation13 + $0x140] sm:$0xff] }
  0x7d   :  { %513 = vmatpush.msra.mxu0 %v440_v54  ;;  %553 = vmatpush.msra.mxu2 %v441_v55  ;;  %v583_v54 = vld [vmem:[#allocation13 + $0x18] sm:$0xff]  ;;  %v621_v55 = vld [vmem:[#allocation13 + $0x148] sm:$0xff] }
  0x7e   :  { %533 = vmatpush.msra.mxu1 %v472_v56  ;;  %573 = vmatpush.msra.mxu3 %v473_v57  ;;  %v580_v56 = vld [vmem:[#allocation13] sm:$0xff]  ;;  %v618_v57 = vld [vmem:[#allocation13 + $0x130] sm:$0xff] }
  0x7f   :  { %514 = vmatpush.msra.mxu0 %v438_v58  ;;  %554 = vmatpush.msra.mxu2 %v439_v59  ;;  %v581_v58 = vld [vmem:[#allocation13 + $0x8] sm:$0xff]  ;;  %v619_v59 = vld [vmem:[#allocation13 + $0x138] sm:$0xff] }
  0x80   :  { %534 = vmatpush.msra.mxu1 %v470_v60  ;;  %574 = vmatpush.msra.mxu3 %v471_v61  ;;  %v616_v60 = vld [vmem:[#allocation13 + $0x120] sm:$0xff]  ;;  %v617_v61 = vld [vmem:[#allocation13 + $0x128] sm:$0xff] }
  0x81   :  { %515 = vmatpush.msra.mxu0 %v436_v62  ;;  %555 = vmatpush.msra.mxu2 %v437_v63  ;;  %v614_v62 = vld [vmem:[#allocation13 + $0x110] sm:$0xff]  ;;  %v615_v63 = vld [vmem:[#allocation13 + $0x118] sm:$0xff] }
  0x82   :  { %535 = vmatpush.msra.mxu1 %v468_v2  ;;  %575 = vmatpush.msra.mxu3 %v469_v3 }
  0x83   :  { %644 = vmatpush.msrb.mxu0 %v610_v0  ;;  %684 = vmatpush.msrb.mxu2 %v611_v1  ;;  %v612_v0 = vld [vmem:[#allocation13 + $0x100] sm:$0xff]  ;;  %v613_v1 = vld [vmem:[#allocation13 + $0x108] sm:$0xff] }
  0x84   :  { %664 = vmatpush.msrb.mxu1 %v642_v6  ;;  %704 = vmatpush.msrb.mxu3 %v643_v7  ;;  %v132_v7 = vld [vmem:[#allocation5] sm:$0xff] }
  0x85   :  { %645 = vmatpush.msrb.mxu0 %v608_v4  ;;  %685 = vmatpush.msrb.mxu2 %v609_v5 }
  0x86   :  { %665 = vmatpush.msrb.mxu1 %v640_v13  ;;  %705 = vmatpush.msrb.mxu3 %v641_v15 }
  0x87   :  { %646 = vmatpush.msrb.mxu0 %v606_v8  ;;  %686 = vmatpush.msrb.mxu2 %v607_v9 }
  0x88   :  { %666 = vmatpush.msrb.mxu1 %v638_v17  ;;  %706 = vmatpush.msrb.mxu3 %v639_v19 }
  0x89   :  { %647 = vmatpush.msrb.mxu0 %v604_v10  ;;  %687 = vmatpush.msrb.mxu2 %v605_v11  ;;  %v134_v11 = vld [vmem:[#allocation7] sm:$0xff] }
  0x8a   :  { %667 = vmatpush.msrb.mxu1 %v636_v21  ;;  %707 = vmatpush.msrb.mxu3 %v637_v23 }
  0x8b   :  { %648 = vmatpush.msrb.mxu0 %v602_v12  ;;  %688 = vmatpush.msrb.mxu2 %v603_v14 }
  0x8c   :  { %668 = vmatpush.msrb.mxu1 %v634_v25  ;;  %708 = vmatpush.msrb.mxu3 %v635_v27 }
  0x8d   :  { %649 = vmatpush.msrb.mxu0 %v600_v16  ;;  %689 = vmatpush.msrb.mxu2 %v601_v18  ;;  %v133_v16 = vld [vmem:[#allocation5 + $0x8] sm:$0xff] }
  0x8e   :  { %669 = vmatpush.msrb.mxu1 %v632_v29  ;;  %709 = vmatpush.msrb.mxu3 %v633_v31 }
  0x8f   :  { %650 = vmatpush.msrb.mxu0 %v598_v20  ;;  %690 = vmatpush.msrb.mxu2 %v599_v22  ;;  %v135_v20 = vld [vmem:[#allocation7 + $0x8] sm:$0xff] }
  0x90   :  { %670 = vmatpush.msrb.mxu1 %v630_v33  ;;  %710 = vmatpush.msrb.mxu3 %v631_v35 }
  0x91   :  { %651 = vmatpush.msrb.mxu0 %v596_v24  ;;  %691 = vmatpush.msrb.mxu2 %v597_v26 }
  0x92   :  { %671 = vmatpush.msrb.mxu1 %v628_v37  ;;  %711 = vmatpush.msrb.mxu3 %v629_v39 }
  0x93   :  { %652 = vmatpush.msrb.mxu0 %v594_v28  ;;  %692 = vmatpush.msrb.mxu2 %v595_v30 }
  0x94   :  { %672 = vmatpush.msrb.mxu1 %v626_v41  ;;  %712 = vmatpush.msrb.mxu3 %v627_v43 }
  0x95   :  { %653 = vmatpush.msrb.mxu0 %v592_v32  ;;  %693 = vmatpush.msrb.mxu2 %v593_v34 }
  0x96   :  { %673 = vmatpush.msrb.mxu1 %v624_v45  ;;  %713 = vmatpush.msrb.mxu3 %v625_v47 }
  0x97   :  { %654 = vmatpush.msrb.mxu0 %v590_v36  ;;  %694 = vmatpush.msrb.mxu2 %v591_v38 }
  0x98   :  { %674 = vmatpush.msrb.mxu1 %v622_v49  ;;  %714 = vmatpush.msrb.mxu3 %v623_v51 }
  0x99   :  { %655 = vmatpush.msrb.mxu0 %v588_v40  ;;  %695 = vmatpush.msrb.mxu2 %v589_v42 }
  0x9a   :  { %675 = vmatpush.msrb.mxu1 %v620_v53  ;;  %715 = vmatpush.msrb.mxu3 %v621_v55 }
  0x9b   :  { %656 = vmatpush.msrb.mxu0 %v586_v44  ;;  %696 = vmatpush.msrb.mxu2 %v587_v46 }
  0x9c   :  { %676 = vmatpush.msrb.mxu1 %v618_v57  ;;  %716 = vmatpush.msrb.mxu3 %v619_v59 }
  0x9d   :  { %657 = vmatpush.msrb.mxu0 %v584_v48  ;;  %697 = vmatpush.msrb.mxu2 %v585_v50 }
  0x9e   :  { %677 = vmatpush.msrb.mxu1 %v616_v60  ;;  %717 = vmatpush.msrb.mxu3 %v617_v61 }
  0x9f   :  { %658 = vmatpush.msrb.mxu0 %v582_v52  ;;  %698 = vmatpush.msrb.mxu2 %v583_v54 }
  0xa0   :  { %678 = vmatpush.msrb.mxu1 %v614_v62  ;;  %718 = vmatpush.msrb.mxu3 %v615_v63 }
  0xa1   :  { %659 = vmatpush.msrb.mxu0 %v580_v56  ;;  %699 = vmatpush.msrb.mxu2 %v581_v58 }
  0xa2   :  { %679 = vmatpush.msrb.mxu1 %v612_v0  ;;  %719 = vmatpush.msrb.mxu3 %v613_v1 }
  0xd4   :  { %v217_v2 = vpop.f32.mrf.mxu0  ;;  %v237_v3 = vpop.f32.mrf.mxu1 }
  0xd5   :  { %v238_v6 = vadd.f32 %v237_v3, %v217_v2 }
  0xd7   :  { %v424_v12 = vmul.f32 %v238_v6, %v132_v7  ;;  %v430_v24 = vmul.f32 %v238_v6, %v134_v11 }
  0xdb   :  { %v257_v4 = vpop.f32.mrf.mxu2  ;;  %v277_v5 = vpop.f32.mrf.mxu3 }
  0xdc   :  { %v278_v15 = vadd.f32 %v277_v5, %v257_v4 }
  0xde   :  { %v361_v8 = vpop.f32.mrf.mxu0  ;;  %v381_v9 = vpop.f32.mrf.mxu1  ;;  %v425_v22 = vmul.f32 %v278_v15, %v133_v16  ;;  %v431_v28 = vmul.f32 %v278_v15, %v135_v20 }
  0xdf   :  { %v382_v10 = vadd.f32 %v381_v9, %v361_v8 }
  0xe1   :  { %v426_v13 = vmul.f32 %v382_v10, %v134_v11  ;;  %v432_v21 = vmul.f32 %v382_v10, %v132_v7 }
  0xe3   :  { %v428_v14 = vsub.f32 %v424_v12, %v426_v13  ;;  %v434_v26 = vadd.f32 %v432_v21, %v430_v24 }
  0xe5   :  { %v401_v17 = vpop.f32.mrf.mxu2  ;;  %v421_v18 = vpop.f32.mrf.mxu3  ;;  %516 = vmatmul.f32.vlgmr.msra.gmra.mxu0 %v428_v14  ;;  %556 = vmatmul.f32.vlgmr.msra.gmra.mxu2 %v428_v14 }
  0xe6   :  { %v422_v19 = vadd.f32 %v421_v18, %v401_v17 }
  0xe8   :  { %v427_v23 = vmul.f32 %v422_v19, %v135_v20  ;;  %v433_v27 = vmul.f32 %v422_v19, %v133_v16 }
  0xea   :  { %v429_v25 = vsub.f32 %v425_v22, %v427_v23  ;;  %v435_v29 = vadd.f32 %v433_v27, %v431_v28 }
  0xec   :  { %536 = vmatmul.f32.vlgmr.msra.gmra.mxu1 %v429_v25  ;;  %576 = vmatmul.f32.vlgmr.msra.gmra.mxu3 %v429_v25 }
  0xed   :  { %660 = vmatmul.f32.vlgmr.msrb.gmra.mxu0 %v434_v26  ;;  %700 = vmatmul.f32.vlgmr.msrb.gmra.mxu2 %v434_v26 }
  0xf4   :  { %680 = vmatmul.f32.vlgmr.msrb.gmra.mxu1 %v435_v29  ;;  %720 = vmatmul.f32.vlgmr.msrb.gmra.mxu3 %v435_v29 }
 0x162   :  { %v517_v30 = vpop.f32.mrf.mxu0 }
 0x168   :  { %v557_v32 = vpop.f32.mrf.mxu2 }
 0x169   :  { %v537_v31 = vpop.f32.mrf.mxu1 }
 0x16a   :  { %v661_v34 = vpop.f32.mrf.mxu0  ;;  %v538_v36 = vadd.f32 %v537_v31, %v517_v30 }
 0x16f   :  { %v577_v33 = vpop.f32.mrf.mxu3 }
 0x170   :  { %v701_v39 = vpop.f32.mrf.mxu2  ;;  %v578_v41 = vadd.f32 %v577_v33, %v557_v32 }
 0x171   :  { %v681_v35 = vpop.f32.mrf.mxu1 }
 0x172   :  { %v682_v37 = vadd.f32 %v681_v35, %v661_v34 }
 0x174   :  { %v724_v38 = vsub.f32 %v538_v36, %v682_v37 }
 0x176   :  { %726 = vst [vmem:[#allocation14] sm:$0xff] %v724_v38 }
 0x177   :  { %v721_v40 = vpop.f32.mrf.mxu3 }
 0x178   :  { %v722_v42 = vadd.f32 %v721_v40, %v701_v39 }
 0x17a   :  { %v725_v43 = vsub.f32 %v578_v41, %v722_v42 }
 0x17c   :  { %727 = vst [vmem:[#allocation14 + $0x8] sm:$0xff] %v725_v43 }
 0x17d   :  { %738 = dma.vmem_to_hbm [thread:$0]  %s734_s6, 256, %s736_s12, [#allocation4]  }
 0x17e   :  { %958 = dma.done.wait [#allocation4], 256  }
 0x17f   :  { %959 = vsyncadd [#allocation4], 4294967040 }
 0x180   :  { %743 = vsyncpa [#allocation3], 1 }
 0x181   :  { %744 = vsyncpa [#allocation6], 1 }
 0x182   :  { %745 = vsyncpa [#allocation9], 1 }
 0x183   :  { %746 = vsyncpa [#allocation12], 1 }
 0x184   :  { %747 = vsyncpa [#allocation4], 1 }

</bundles_post_ra>
